<compile_context>
chip_gen: v7x
topology: tpu7x:2x2x1
jax: 0.10.0
libtpu: 0.0.40
codegen_flags: <defaults>
</compile_context>

<pallas_src>
import functools

import jax
import jax.numpy as jnp
from jax.experimental import pallas as pl
from jax.experimental.pallas import tpu as pltpu


# Rows per grid step are fully (statically) unrolled in the kernel; keep the
# unroll bounded so compile time stays sane even for narrow-channel inputs.
_MAX_UNROLL_ROWS = 32


def _upsample_conv1x1_kernel(x_ref, w_ref, b_ref, ew_ref, o_ref, *,
                             w_dim, th, wc):
    # x_ref : (1, C, TH*W)      input rows, spatial flattened (W-major)
    # w_ref : (Cout, C)         1x1-conv weights (VMEM, grid-resident)
    # b_ref : (Cout, 1)         bias, float32
    # ew_ref: (wc, 2*wc)        0/1 nearest-neighbor column-expansion block
    # o_ref : (1, Cout, 4*TH*W) output rows: [dup2(row) | dup2(row)] per row
    two_w = 2 * w_dim
    n_wc = w_dim // wc

    w_mat = w_ref[...]          # hoisted loop invariants
    bias = b_ref[...]
    ew = ew_ref[...]

    for h in range(th):                                   # static unroll
        # 1x1 conv over channels on the MXU (+ bias), f32 accumulate.
        xr = x_ref[0, :, pl.ds(h * w_dim, w_dim)]         # (C, W), static slice
        yr = jnp.dot(w_mat, xr, preferred_element_type=jnp.float32) + bias
        yr = yr.astype(ew.dtype)                          # (Cout, W)

        obase = h * 4 * w_dim
        for c in range(n_wc):
            yc = yr[:, c * wc:(c + 1) * wc] if n_wc > 1 else yr
            # Nearest-neighbor column duplication = exact 0/1 matmul (MXU).
            up = jnp.dot(yc, ew, preferred_element_type=jnp.float32)
            up = up.astype(o_ref.dtype)                   # (Cout, 2*wc)
            # Row duplication is free: the 4W-wide output row holds two copies
            # of the 2W-wide expanded row; both stores are dense lane stores.
            o_ref[0, :, pl.ds(obase + 2 * c * wc, 2 * wc)] = up
            o_ref[0, :, pl.ds(obase + two_w + 2 * c * wc, 2 * wc)] = up


def _vmem_capacity_bytes():
    try:
        return int(pltpu.get_tpu_info().vmem_capacity_bytes)
    except Exception:
        return 64 << 20        # conservative (v7x-sized) default


def _pick_w_chunk(w):
    """Column-expansion chunk: bounds expansion FLOPs to O(wc) per element."""
    if w <= 256:
        return w
    for cand in (256, 128):
        if w % cand == 0:
            return cand
    for d in range(256, 0, -1):
        if w % d == 0:
            return d
    return w


def _pick_row_block(h, w, c_out, itemsize, vmem_capacity):
    """Rows per grid step, budgeted from the OUTPUT block (2x the input bytes).

    Constraints: TH divides H; TH*W % 128 == 0 (lane tiling) or TH == H;
    prefer >= 2 grid steps along H; bounded static unroll; output block within
    a per-generation VMEM budget (capacity/16, <= 8 MiB)."""
    out_row_bytes = c_out * 4 * w * itemsize
    budget = max(out_row_bytes, min(vmem_capacity // 16, 8 << 20))
    max_rows = max(1, budget // out_row_bytes)
    cap = h if h < 2 else max(1, h // 2)        # keep >= 2 grid steps when possible
    best = 0
    for th in range(1, h + 1):
        if h % th or th > cap or th > max_rows or th > _MAX_UNROLL_ROWS:
            continue
        if (th * w) % 128 != 0:
            continue
        best = th
    if best == 0:
        # Whole image per step (block shape == full array dims is always legal).
        # TODO(synk): for very large ragged H*W this falls back to a big block.
        best = h
    return best


def upsampling_forward(x_nchw, weight, bias):
    """Equivalent of UpSampling.forward with use_deform=False.

    x_nchw : (N, Cin, H, W) float32 or bfloat16
    weight : (Cout, Cin, 1, 1)   (Cout = Cin // 2)
    bias   : (Cout,)
    returns: (N, Cout, 2H, 2W) in x's dtype
    """
    N, C, H, W = x_nchw.shape
    Cout = weight.shape[0]
    x_dtype = x_nchw.dtype
    itemsize = x_nchw.dtype.itemsize
    compute_dtype = jnp.bfloat16 if x_dtype == jnp.bfloat16 else jnp.float32

    w_mat = weight.reshape(Cout, C).astype(compute_dtype)
    b_vec = bias.reshape(Cout, 1).astype(jnp.float32)

    # 0/1 column expansion block:  ew[k, j] = (k == j // 2)
    wc = _pick_w_chunk(W)
    k_idx = jnp.arange(wc, dtype=jnp.int32)[:, None]
    j_idx = jnp.arange(2 * wc, dtype=jnp.int32)[None, :]
    ew = (k_idx == (j_idx // 2)).astype(compute_dtype)          # (wc, 2*wc)

    vmem_cap = _vmem_capacity_bytes()
    th = _pick_row_block(H, W, Cout, itemsize, vmem_cap)
    s = th * W
    grid = (N, H // th)

    in_block_bytes = C * s * itemsize
    out_block_bytes = Cout * 4 * s * itemsize
    need = 2 * (in_block_bytes + out_block_bytes) + (4 << 20)   # double-buffered
    vmem_limit = int(min(max(need, 24 << 20), 128 << 20))

    x_flat = x_nchw.reshape(N, C, H * W)                        # free reshape

    kernel = functools.partial(_upsample_conv1x1_kernel,
                               w_dim=W, th=th, wc=wc)

    out_flat = pl.pallas_call(
        kernel,
        out_shape=jax.ShapeDtypeStruct((N, Cout, 4 * H * W), x_dtype),
        grid_spec=pltpu.PrefetchScalarGridSpec(
            num_scalar_prefetch=0,
            grid=grid,
            in_specs=[
                pl.BlockSpec((1, C, s), lambda n, hb: (n, 0, hb)),
                pl.BlockSpec((Cout, C), lambda n, hb: (0, 0)),      # resident
                pl.BlockSpec((Cout, 1), lambda n, hb: (0, 0)),      # resident
                pl.BlockSpec((wc, 2 * wc), lambda n, hb: (0, 0)),   # resident
            ],
            out_specs=pl.BlockSpec((1, Cout, 4 * s), lambda n, hb: (n, 0, hb)),
        ),
        compiler_params=pltpu.CompilerParams(
            dimension_semantics=("parallel", "parallel"),
            vmem_limit_bytes=vmem_limit,
        ),
    )(x_flat, w_mat, b_vec, ew)

    # (N, Cout, H, 2, 2W) row-pair layout -> (N, Cout, 2H, 2W); free bitcast.
    return out_flat.reshape(N, Cout, 2 * H, 2 * W)


def _reference(x_nchw, weight, bias):
    # pure-JAX reference: F.interpolate(scale=2, nearest) then 1x1 conv
    xu = jnp.repeat(jnp.repeat(x_nchw, 2, axis=2), 2, axis=3)
    w2 = weight.reshape(weight.shape[0], weight.shape[1])   # (Cout, Cin)
    y = jnp.einsum('nchw,oc->nohw', xu, w2)
    return y + bias[None, :, None, None]


if __name__ == "__main__":
    N, C, H, W = 2, 4, 16, 16
    Cout = C // 2

    key = jax.random.PRNGKey(0)
    kx, kw, kb = jax.random.split(key, 3)
    x = jax.random.normal(kx, (N, C, H, W), dtype=jnp.float32)
    weight = 0.1 * jax.random.normal(kw, (Cout, C, 1, 1), dtype=jnp.float32)
    bias = 0.1 * jax.random.normal(kb, (Cout,), dtype=jnp.float32)

    out = upsampling_forward(x, weight, bias)
    out = jax.block_until_ready(out)

    ref = _reference(x, weight, bias)
    assert out.shape == (N, Cout, 2 * H, 2 * W), out.shape
    assert jnp.allclose(out, ref, atol=1e-5, rtol=1e-5), float(
        jnp.max(jnp.abs(out - ref)))

    print("KERNEL_OK")
</pallas_src>

<mosaic_0001>
module attributes {stable_mosaic.version = 11 : i64} {
  func.func @_upsample_conv1x1_kernel(%arg0: i32, %arg1: i32, %arg2: memref<1x4x128xf32, #tpu.memory_space<vmem>>, %arg3: memref<2x4xf32, #tpu.memory_space<vmem>>, %arg4: memref<2x1xf32, #tpu.memory_space<vmem>>, %arg5: memref<16x32xf32, #tpu.memory_space<vmem>>, %arg6: memref<1x2x512xf32, #tpu.memory_space<vmem>>) attributes {dimension_semantics = [#tpu.dimension_semantics<parallel>, #tpu.dimension_semantics<parallel>], iteration_bounds = array<i64: 2, 2>, scalar_prefetch = 0 : i64, scratch_operands = 0 : i64, tpu.core_type = #tpu.core_type<tc>, window_params = [{transform_indices = @transform_0, window_bounds = array<i64: 1, 4, 128>}, {pipeline_mode = #tpu.pipeline_mode<synchronous>, transform_indices = @transform_1, window_bounds = array<i64: 2, 4>}, {pipeline_mode = #tpu.pipeline_mode<synchronous>, transform_indices = @transform_2, window_bounds = array<i64: 2, 1>}, {pipeline_mode = #tpu.pipeline_mode<synchronous>, transform_indices = @transform_3, window_bounds = array<i64: 16, 32>}, {transform_indices = @transform_4, window_bounds = array<i64: 1, 2, 512>}]} {
    %c0 = arith.constant 0 : index
    %c0_0 = arith.constant 0 : index
    %0 = vector.load %arg3[%c0, %c0_0] : memref<2x4xf32, #tpu.memory_space<vmem>>, vector<2x4xf32>
    %c0_1 = arith.constant 0 : index
    %c0_2 = arith.constant 0 : index
    %1 = vector.load %arg4[%c0_1, %c0_2] : memref<2x1xf32, #tpu.memory_space<vmem>>, vector<2x1xf32>
    %c0_3 = arith.constant 0 : index
    %c0_4 = arith.constant 0 : index
    %2 = vector.load %arg5[%c0_3, %c0_4] : memref<16x32xf32, #tpu.memory_space<vmem>>, vector<16x32xf32>
    %c0_5 = arith.constant 0 : index
    %c0_6 = arith.constant 0 : index
    %c0_7 = arith.constant 0 : index
    %3 = vector.load %arg2[%c0_5, %c0_6, %c0_7] : memref<1x4x128xf32, #tpu.memory_space<vmem>>, vector<1x4x16xf32>
    %4 = vector.shape_cast %3 : vector<1x4x16xf32> to vector<4x16xf32>
    %cst = arith.constant dense<0.000000e+00> : vector<2x16xf32>
    %5 = tpu.matmul %0, %4, %cst {dimension_numbers = #tpu.dot_dimension_numbers<[1], [0], [0], [1], [0, 0, 1, 1], [], []>} : vector<2x4xf32>, vector<4x16xf32>, vector<2x16xf32> -> vector<2x16xf32>
    %6 = vector.broadcast %1 : vector<2x1xf32> to vector<2x16xf32>
    %7 = arith.addf %5, %6 : vector<2x16xf32>
    %cst_8 = arith.constant dense<0.000000e+00> : vector<2x32xf32>
    %8 = tpu.matmul %7, %2, %cst_8 {dimension_numbers = #tpu.dot_dimension_numbers<[1], [0], [0], [1], [0, 0, 1, 1], [], []>} : vector<2x16xf32>, vector<16x32xf32>, vector<2x32xf32> -> vector<2x32xf32>
    %c0_9 = arith.constant 0 : index
    %c0_10 = arith.constant 0 : index
    %c0_11 = arith.constant 0 : index
    %9 = vector.load %arg6[%c0_9, %c0_10, %c0_11] : memref<1x2x512xf32, #tpu.memory_space<vmem>>, vector<1x2x32xf32>
    %10 = vector.shape_cast %9 : vector<1x2x32xf32> to vector<2x32xf32>
    %11 = vector.shape_cast %8 : vector<2x32xf32> to vector<1x2x32xf32>
    tpu.vector_store %arg6[%c0_9, %c0_10, %c0_11], %11 {strides = array<i32>} : memref<1x2x512xf32, #tpu.memory_space<vmem>>, vector<1x2x32xf32>,
    %c0_12 = arith.constant 0 : index
    %c0_13 = arith.constant 0 : index
    %c32 = arith.constant 32 : index
    %12 = vector.load %arg6[%c0_12, %c0_13, %c32] : memref<1x2x512xf32, #tpu.memory_space<vmem>>, vector<1x2x32xf32>
    %13 = vector.shape_cast %12 : vector<1x2x32xf32> to vector<2x32xf32>
    %14 = vector.shape_cast %8 : vector<2x32xf32> to vector<1x2x32xf32>
    tpu.vector_store %arg6[%c0_12, %c0_13, %c32], %14 {strides = array<i32>} : memref<1x2x512xf32, #tpu.memory_space<vmem>>, vector<1x2x32xf32>,
    %c0_14 = arith.constant 0 : index
    %c0_15 = arith.constant 0 : index
    %c16 = arith.constant 16 : index
    %15 = vector.load %arg2[%c0_14, %c0_15, %c16] : memref<1x4x128xf32, #tpu.memory_space<vmem>>, vector<1x4x16xf32>
    %16 = vector.shape_cast %15 : vector<1x4x16xf32> to vector<4x16xf32>
    %cst_16 = arith.constant dense<0.000000e+00> : vector<2x16xf32>
    %17 = tpu.matmul %0, %16, %cst_16 {dimension_numbers = #tpu.dot_dimension_numbers<[1], [0], [0], [1], [0, 0, 1, 1], [], []>} : vector<2x4xf32>, vector<4x16xf32>, vector<2x16xf32> -> vector<2x16xf32>
    %18 = vector.broadcast %1 : vector<2x1xf32> to vector<2x16xf32>
    %19 = arith.addf %17, %18 : vector<2x16xf32>
    %cst_17 = arith.constant dense<0.000000e+00> : vector<2x32xf32>
    %20 = tpu.matmul %19, %2, %cst_17 {dimension_numbers = #tpu.dot_dimension_numbers<[1], [0], [0], [1], [0, 0, 1, 1], [], []>} : vector<2x16xf32>, vector<16x32xf32>, vector<2x32xf32> -> vector<2x32xf32>
    %c0_18 = arith.constant 0 : index
    %c0_19 = arith.constant 0 : index
    %c64 = arith.constant 64 : index
    %21 = vector.load %arg6[%c0_18, %c0_19, %c64] : memref<1x2x512xf32, #tpu.memory_space<vmem>>, vector<1x2x32xf32>
    %22 = vector.shape_cast %21 : vector<1x2x32xf32> to vector<2x32xf32>
    %23 = vector.shape_cast %20 : vector<2x32xf32> to vector<1x2x32xf32>
    tpu.vector_store %arg6[%c0_18, %c0_19, %c64], %23 {strides = array<i32>} : memref<1x2x512xf32, #tpu.memory_space<vmem>>, vector<1x2x32xf32>,
    %c0_20 = arith.constant 0 : index
    %c0_21 = arith.constant 0 : index
    %c96 = arith.constant 96 : index
    %24 = vector.load %arg6[%c0_20, %c0_21, %c96] : memref<1x2x512xf32, #tpu.memory_space<vmem>>, vector<1x2x32xf32>
    %25 = vector.shape_cast %24 : vector<1x2x32xf32> to vector<2x32xf32>
    %26 = vector.shape_cast %20 : vector<2x32xf32> to vector<1x2x32xf32>
    tpu.vector_store %arg6[%c0_20, %c0_21, %c96], %26 {strides = array<i32>} : memref<1x2x512xf32, #tpu.memory_space<vmem>>, vector<1x2x32xf32>,
    %c0_22 = arith.constant 0 : index
    %c0_23 = arith.constant 0 : index
    %c32_24 = arith.constant 32 : index
    %27 = vector.load %arg2[%c0_22, %c0_23, %c32_24] : memref<1x4x128xf32, #tpu.memory_space<vmem>>, vector<1x4x16xf32>
    %28 = vector.shape_cast %27 : vector<1x4x16xf32> to vector<4x16xf32>
    %cst_25 = arith.constant dense<0.000000e+00> : vector<2x16xf32>
    %29 = tpu.matmul %0, %28, %cst_25 {dimension_numbers = #tpu.dot_dimension_numbers<[1], [0], [0], [1], [0, 0, 1, 1], [], []>} : vector<2x4xf32>, vector<4x16xf32>, vector<2x16xf32> -> vector<2x16xf32>
    %30 = vector.broadcast %1 : vector<2x1xf32> to vector<2x16xf32>
    %31 = arith.addf %29, %30 : vector<2x16xf32>
    %cst_26 = arith.constant dense<0.000000e+00> : vector<2x32xf32>
    %32 = tpu.matmul %31, %2, %cst_26 {dimension_numbers = #tpu.dot_dimension_numbers<[1], [0], [0], [1], [0, 0, 1, 1], [], []>} : vector<2x16xf32>, vector<16x32xf32>, vector<2x32xf32> -> vector<2x32xf32>
    %c0_27 = arith.constant 0 : index
    %c0_28 = arith.constant 0 : index
    %c128 = arith.constant 128 : index
    %33 = vector.load %arg6[%c0_27, %c0_28, %c128] : memref<1x2x512xf32, #tpu.memory_space<vmem>>, vector<1x2x32xf32>
    %34 = vector.shape_cast %33 : vector<1x2x32xf32> to vector<2x32xf32>
    %35 = vector.shape_cast %32 : vector<2x32xf32> to vector<1x2x32xf32>
    tpu.vector_store %arg6[%c0_27, %c0_28, %c128], %35 {strides = array<i32>} : memref<1x2x512xf32, #tpu.memory_space<vmem>>, vector<1x2x32xf32>,
    %c0_29 = arith.constant 0 : index
    %c0_30 = arith.constant 0 : index
    %c160 = arith.constant 160 : index
    %36 = vector.load %arg6[%c0_29, %c0_30, %c160] : memref<1x2x512xf32, #tpu.memory_space<vmem>>, vector<1x2x32xf32>
    %37 = vector.shape_cast %36 : vector<1x2x32xf32> to vector<2x32xf32>
    %38 = vector.shape_cast %32 : vector<2x32xf32> to vector<1x2x32xf32>
    tpu.vector_store %arg6[%c0_29, %c0_30, %c160], %38 {strides = array<i32>} : memref<1x2x512xf32, #tpu.memory_space<vmem>>, vector<1x2x32xf32>,
    %c0_31 = arith.constant 0 : index
    %c0_32 = arith.constant 0 : index
    %c48 = arith.constant 48 : index
    %39 = vector.load %arg2[%c0_31, %c0_32, %c48] : memref<1x4x128xf32, #tpu.memory_space<vmem>>, vector<1x4x16xf32>
    %40 = vector.shape_cast %39 : vector<1x4x16xf32> to vector<4x16xf32>
    %cst_33 = arith.constant dense<0.000000e+00> : vector<2x16xf32>
    %41 = tpu.matmul %0, %40, %cst_33 {dimension_numbers = #tpu.dot_dimension_numbers<[1], [0], [0], [1], [0, 0, 1, 1], [], []>} : vector<2x4xf32>, vector<4x16xf32>, vector<2x16xf32> -> vector<2x16xf32>
    %42 = vector.broadcast %1 : vector<2x1xf32> to vector<2x16xf32>
    %43 = arith.addf %41, %42 : vector<2x16xf32>
    %cst_34 = arith.constant dense<0.000000e+00> : vector<2x32xf32>
    %44 = tpu.matmul %43, %2, %cst_34 {dimension_numbers = #tpu.dot_dimension_numbers<[1], [0], [0], [1], [0, 0, 1, 1], [], []>} : vector<2x16xf32>, vector<16x32xf32>, vector<2x32xf32> -> vector<2x32xf32>
    %c0_35 = arith.constant 0 : index
    %c0_36 = arith.constant 0 : index
    %c192 = arith.constant 192 : index
    %45 = vector.load %arg6[%c0_35, %c0_36, %c192] : memref<1x2x512xf32, #tpu.memory_space<vmem>>, vector<1x2x32xf32>
    %46 = vector.shape_cast %45 : vector<1x2x32xf32> to vector<2x32xf32>
    %47 = vector.shape_cast %44 : vector<2x32xf32> to vector<1x2x32xf32>
    tpu.vector_store %arg6[%c0_35, %c0_36, %c192], %47 {strides = array<i32>} : memref<1x2x512xf32, #tpu.memory_space<vmem>>, vector<1x2x32xf32>,
    %c0_37 = arith.constant 0 : index
    %c0_38 = arith.constant 0 : index
    %c224 = arith.constant 224 : index
    %48 = vector.load %arg6[%c0_37, %c0_38, %c224] : memref<1x2x512xf32, #tpu.memory_space<vmem>>, vector<1x2x32xf32>
    %49 = vector.shape_cast %48 : vector<1x2x32xf32> to vector<2x32xf32>
    %50 = vector.shape_cast %44 : vector<2x32xf32> to vector<1x2x32xf32>
    tpu.vector_store %arg6[%c0_37, %c0_38, %c224], %50 {strides = array<i32>} : memref<1x2x512xf32, #tpu.memory_space<vmem>>, vector<1x2x32xf32>,
    %c0_39 = arith.constant 0 : index
    %c0_40 = arith.constant 0 : index
    %c64_41 = arith.constant 64 : index
    %51 = vector.load %arg2[%c0_39, %c0_40, %c64_41] : memref<1x4x128xf32, #tpu.memory_space<vmem>>, vector<1x4x16xf32>
    %52 = vector.shape_cast %51 : vector<1x4x16xf32> to vector<4x16xf32>
    %cst_42 = arith.constant dense<0.000000e+00> : vector<2x16xf32>
    %53 = tpu.matmul %0, %52, %cst_42 {dimension_numbers = #tpu.dot_dimension_numbers<[1], [0], [0], [1], [0, 0, 1, 1], [], []>} : vector<2x4xf32>, vector<4x16xf32>, vector<2x16xf32> -> vector<2x16xf32>
    %54 = vector.broadcast %1 : vector<2x1xf32> to vector<2x16xf32>
    %55 = arith.addf %53, %54 : vector<2x16xf32>
    %cst_43 = arith.constant dense<0.000000e+00> : vector<2x32xf32>
    %56 = tpu.matmul %55, %2, %cst_43 {dimension_numbers = #tpu.dot_dimension_numbers<[1], [0], [0], [1], [0, 0, 1, 1], [], []>} : vector<2x16xf32>, vector<16x32xf32>, vector<2x32xf32> -> vector<2x32xf32>
    %c0_44 = arith.constant 0 : index
    %c0_45 = arith.constant 0 : index
    %c256 = arith.constant 256 : index
    %57 = vector.load %arg6[%c0_44, %c0_45, %c256] : memref<1x2x512xf32, #tpu.memory_space<vmem>>, vector<1x2x32xf32>
    %58 = vector.shape_cast %57 : vector<1x2x32xf32> to vector<2x32xf32>
    %59 = vector.shape_cast %56 : vector<2x32xf32> to vector<1x2x32xf32>
    tpu.vector_store %arg6[%c0_44, %c0_45, %c256], %59 {strides = array<i32>} : memref<1x2x512xf32, #tpu.memory_space<vmem>>, vector<1x2x32xf32>,
    %c0_46 = arith.constant 0 : index
    %c0_47 = arith.constant 0 : index
    %c288 = arith.constant 288 : index
    %60 = vector.load %arg6[%c0_46, %c0_47, %c288] : memref<1x2x512xf32, #tpu.memory_space<vmem>>, vector<1x2x32xf32>
    %61 = vector.shape_cast %60 : vector<1x2x32xf32> to vector<2x32xf32>
    %62 = vector.shape_cast %56 : vector<2x32xf32> to vector<1x2x32xf32>
    tpu.vector_store %arg6[%c0_46, %c0_47, %c288], %62 {strides = array<i32>} : memref<1x2x512xf32, #tpu.memory_space<vmem>>, vector<1x2x32xf32>,
    %c0_48 = arith.constant 0 : index
    %c0_49 = arith.constant 0 : index
    %c80 = arith.constant 80 : index
    %63 = vector.load %arg2[%c0_48, %c0_49, %c80] : memref<1x4x128xf32, #tpu.memory_space<vmem>>, vector<1x4x16xf32>
    %64 = vector.shape_cast %63 : vector<1x4x16xf32> to vector<4x16xf32>
    %cst_50 = arith.constant dense<0.000000e+00> : vector<2x16xf32>
    %65 = tpu.matmul %0, %64, %cst_50 {dimension_numbers = #tpu.dot_dimension_numbers<[1], [0], [0], [1], [0, 0, 1, 1], [], []>} : vector<2x4xf32>, vector<4x16xf32>, vector<2x16xf32> -> vector<2x16xf32>
    %66 = vector.broadcast %1 : vector<2x1xf32> to vector<2x16xf32>
    %67 = arith.addf %65, %66 : vector<2x16xf32>
    %cst_51 = arith.constant dense<0.000000e+00> : vector<2x32xf32>
    %68 = tpu.matmul %67, %2, %cst_51 {dimension_numbers = #tpu.dot_dimension_numbers<[1], [0], [0], [1], [0, 0, 1, 1], [], []>} : vector<2x16xf32>, vector<16x32xf32>, vector<2x32xf32> -> vector<2x32xf32>
    %c0_52 = arith.constant 0 : index
    %c0_53 = arith.constant 0 : index
    %c320 = arith.constant 320 : index
    %69 = vector.load %arg6[%c0_52, %c0_53, %c320] : memref<1x2x512xf32, #tpu.memory_space<vmem>>, vector<1x2x32xf32>
    %70 = vector.shape_cast %69 : vector<1x2x32xf32> to vector<2x32xf32>
    %71 = vector.shape_cast %68 : vector<2x32xf32> to vector<1x2x32xf32>
    tpu.vector_store %arg6[%c0_52, %c0_53, %c320], %71 {strides = array<i32>} : memref<1x2x512xf32, #tpu.memory_space<vmem>>, vector<1x2x32xf32>,
    %c0_54 = arith.constant 0 : index
    %c0_55 = arith.constant 0 : index
    %c352 = arith.constant 352 : index
    %72 = vector.load %arg6[%c0_54, %c0_55, %c352] : memref<1x2x512xf32, #tpu.memory_space<vmem>>, vector<1x2x32xf32>
    %73 = vector.shape_cast %72 : vector<1x2x32xf32> to vector<2x32xf32>
    %74 = vector.shape_cast %68 : vector<2x32xf32> to vector<1x2x32xf32>
    tpu.vector_store %arg6[%c0_54, %c0_55, %c352], %74 {strides = array<i32>} : memref<1x2x512xf32, #tpu.memory_space<vmem>>, vector<1x2x32xf32>,
    %c0_56 = arith.constant 0 : index
    %c0_57 = arith.constant 0 : index
    %c96_58 = arith.constant 96 : index
    %75 = vector.load %arg2[%c0_56, %c0_57, %c96_58] : memref<1x4x128xf32, #tpu.memory_space<vmem>>, vector<1x4x16xf32>
    %76 = vector.shape_cast %75 : vector<1x4x16xf32> to vector<4x16xf32>
    %cst_59 = arith.constant dense<0.000000e+00> : vector<2x16xf32>
    %77 = tpu.matmul %0, %76, %cst_59 {dimension_numbers = #tpu.dot_dimension_numbers<[1], [0], [0], [1], [0, 0, 1, 1], [], []>} : vector<2x4xf32>, vector<4x16xf32>, vector<2x16xf32> -> vector<2x16xf32>
    %78 = vector.broadcast %1 : vector<2x1xf32> to vector<2x16xf32>
    %79 = arith.addf %77, %78 : vector<2x16xf32>
    %cst_60 = arith.constant dense<0.000000e+00> : vector<2x32xf32>
    %80 = tpu.matmul %79, %2, %cst_60 {dimension_numbers = #tpu.dot_dimension_numbers<[1], [0], [0], [1], [0, 0, 1, 1], [], []>} : vector<2x16xf32>, vector<16x32xf32>, vector<2x32xf32> -> vector<2x32xf32>
    %c0_61 = arith.constant 0 : index
    %c0_62 = arith.constant 0 : index
    %c384 = arith.constant 384 : index
    %81 = vector.load %arg6[%c0_61, %c0_62, %c384] : memref<1x2x512xf32, #tpu.memory_space<vmem>>, vector<1x2x32xf32>
    %82 = vector.shape_cast %81 : vector<1x2x32xf32> to vector<2x32xf32>
    %83 = vector.shape_cast %80 : vector<2x32xf32> to vector<1x2x32xf32>
    tpu.vector_store %arg6[%c0_61, %c0_62, %c384], %83 {strides = array<i32>} : memref<1x2x512xf32, #tpu.memory_space<vmem>>, vector<1x2x32xf32>,
    %c0_63 = arith.constant 0 : index
    %c0_64 = arith.constant 0 : index
    %c416 = arith.constant 416 : index
    %84 = vector.load %arg6[%c0_63, %c0_64, %c416] : memref<1x2x512xf32, #tpu.memory_space<vmem>>, vector<1x2x32xf32>
    %85 = vector.shape_cast %84 : vector<1x2x32xf32> to vector<2x32xf32>
    %86 = vector.shape_cast %80 : vector<2x32xf32> to vector<1x2x32xf32>
    tpu.vector_store %arg6[%c0_63, %c0_64, %c416], %86 {strides = array<i32>} : memref<1x2x512xf32, #tpu.memory_space<vmem>>, vector<1x2x32xf32>,
    %c0_65 = arith.constant 0 : index
    %c0_66 = arith.constant 0 : index
    %c112 = arith.constant 112 : index
    %87 = vector.load %arg2[%c0_65, %c0_66, %c112] : memref<1x4x128xf32, #tpu.memory_space<vmem>>, vector<1x4x16xf32>
    %88 = vector.shape_cast %87 : vector<1x4x16xf32> to vector<4x16xf32>
    %cst_67 = arith.constant dense<0.000000e+00> : vector<2x16xf32>
    %89 = tpu.matmul %0, %88, %cst_67 {dimension_numbers = #tpu.dot_dimension_numbers<[1], [0], [0], [1], [0, 0, 1, 1], [], []>} : vector<2x4xf32>, vector<4x16xf32>, vector<2x16xf32> -> vector<2x16xf32>
    %90 = vector.broadcast %1 : vector<2x1xf32> to vector<2x16xf32>
    %91 = arith.addf %89, %90 : vector<2x16xf32>
    %cst_68 = arith.constant dense<0.000000e+00> : vector<2x32xf32>
    %92 = tpu.matmul %91, %2, %cst_68 {dimension_numbers = #tpu.dot_dimension_numbers<[1], [0], [0], [1], [0, 0, 1, 1], [], []>} : vector<2x16xf32>, vector<16x32xf32>, vector<2x32xf32> -> vector<2x32xf32>
    %c0_69 = arith.constant 0 : index
    %c0_70 = arith.constant 0 : index
    %c448 = arith.constant 448 : index
    %93 = vector.load %arg6[%c0_69, %c0_70, %c448] : memref<1x2x512xf32, #tpu.memory_space<vmem>>, vector<1x2x32xf32>
    %94 = vector.shape_cast %93 : vector<1x2x32xf32> to vector<2x32xf32>
    %95 = vector.shape_cast %92 : vector<2x32xf32> to vector<1x2x32xf32>
    tpu.vector_store %arg6[%c0_69, %c0_70, %c448], %95 {strides = array<i32>} : memref<1x2x512xf32, #tpu.memory_space<vmem>>, vector<1x2x32xf32>,
    %c0_71 = arith.constant 0 : index
    %c0_72 = arith.constant 0 : index
    %c480 = arith.constant 480 : index
    %96 = vector.load %arg6[%c0_71, %c0_72, %c480] : memref<1x2x512xf32, #tpu.memory_space<vmem>>, vector<1x2x32xf32>
    %97 = vector.shape_cast %96 : vector<1x2x32xf32> to vector<2x32xf32>
    %98 = vector.shape_cast %92 : vector<2x32xf32> to vector<1x2x32xf32>
    tpu.vector_store %arg6[%c0_71, %c0_72, %c480], %98 {strides = array<i32>} : memref<1x2x512xf32, #tpu.memory_space<vmem>>, vector<1x2x32xf32>,
    return
  }
  func.func @transform_0(%arg0: i32, %arg1: i32) -> (i32, i32, i32) {
    %c0_i32 = arith.constant 0 : i32
    %c0_i32_0 = arith.constant 0 : i32
    return %arg0, %c0_i32, %arg1 : i32, i32, i32
  }
  func.func @transform_1(%arg0: i32, %arg1: i32) -> (i32, i32) {
    %c0_i32 = arith.constant 0 : i32
    %c0_i32_0 = arith.constant 0 : i32
    %c0_i32_1 = arith.constant 0 : i32
    return %c0_i32, %c0_i32_0 : i32, i32
  }
  func.func @transform_2(%arg0: i32, %arg1: i32) -> (i32, i32) {
    %c0_i32 = arith.constant 0 : i32
    %c0_i32_0 = arith.constant 0 : i32
    %c0_i32_1 = arith.constant 0 : i32
    return %c0_i32, %c0_i32_0 : i32, i32
  }
  func.func @transform_3(%arg0: i32, %arg1: i32) -> (i32, i32) {
    %c0_i32 = arith.constant 0 : i32
    %c0_i32_0 = arith.constant 0 : i32
    %c0_i32_1 = arith.constant 0 : i32
    return %c0_i32, %c0_i32_0 : i32, i32
  }
  func.func @transform_4(%arg0: i32, %arg1: i32) -> (i32, i32, i32) {
    %c0_i32 = arith.constant 0 : i32
    %c0_i32_0 = arith.constant 0 : i32
    return %arg0, %c0_i32, %arg1 : i32, i32, i32
  }
}

</mosaic_0001>

<bundles_post_ra>
// kernel: tpu_custom_call.1
= control target key start
LH: loop header
LB: loop body
LE: loop exit
PB: predicated region body
PF: predicated region fallthrough
CT: control target
= control target key end

     0   :  { %s2583_s0 = inlined_call_operand.hbm [shape: f32[2,4,256], index: 0, kind: input, shape index: {}]   ;;  %s2584_s1 = inlined_call_operand.vmem [shape: f32[2,4], index: 1, kind: input, shape index: {}]   ;;  %s2585_s2 = inlined_call_operand.vmem [shape: f32[2,1], index: 2, kind: input, shape index: {}]   ;;  %s2586_s3 = inlined_call_operand.hbm [shape: f32[16,32], index: 3, kind: input, shape index: {}]   ;;  %s2587_s4 = inlined_call_operand.hbm [shape: f32[2,2,1024], index: 4, kind: output, shape index: {}]  }
   0x1   :  { %2596 = sst [smem:[#allocation14_spill]] %s2586_s3 }
   0x2   :  { %2597 = sst [smem:[#allocation15_spill]] %s2587_s4 }
   0x3   :  { %9 = vsyncpa [#allocation3], 0 }
   0x4   :  { %11 = vsyncpa [#allocation3 + $0x1], 0 }
   0x5   :  { %12 = vsyncpa [#allocation6], 0 }
   0x6   :  { %13 = vsyncpa [#allocation4], 0 }
   0x7   :  { %15 = vsyncpa [#allocation4 + $0x1], 0  ;;  %s2196_s15 = smov 0   ;;  %s2198_s16 = smov 0  }
   0x8   :  { %s2200_s17 = smov 0   ;;  %s2202_s18 = smov 0  }
   0x9   :  { %s2204_s19 = smov 0   ;;  %s2206_s20 = smov 0  }
   0xa   :  { %s2208_s21 = smov 0   ;;  %s2210_s22 = smov 0  }
   0xb LB: > { %2598 = sst [smem:[#allocation11_spill]] %s2124_s15  ;;  %s1685_s23 = sadd.s32 4294967295, %s2152_s22   ;;  %s2152_s22 = sphi %s2210_s22, %s21_s22   ;;  %s2148_s21 = sphi %s2208_s21, %s2626_s21   ;;  %s2144_s20 = sphi %s2206_s20, %s2625_s20   ;;  %s2140_s19 = sphi %s2204_s19, %s2624_s19   ;;  %s2136_s18 = sphi %s2202_s18, %s2623_s18   ;;  %s2132_s17 = sphi %s2200_s17, %s2622_s17   ;;  %s2128_s16 = sphi %s2198_s16, %s2621_s16   ;;  %s2124_s15 = sphi %s2196_s15, %s2620_s15  }
   0xc   : > { %s1686_s24 = sadd.s32 4294967294, %s2152_s22   ;;  %p55_p0 = scmp.ne.s32.totalorder %s2128_s16, %s2124_s15 }
   0xd   : > { %p2240_p1 = scmp.eq.s32.totalorder %s1685_s23, 0  ;;  %p2244_p2 = scmp.eq.s32.totalorder %s1685_s23, 3 }
   0xe   : > { %p150_p3 = scmp.eq.s32.totalorder %s1686_s24, 3  ;;  %p1687_p5 = scmp.ge.s32.totalorder %s2152_s22, 1 }
   0xf   : > { %s2599_s25 = scalar_select %p2240_p1, 1, 0 }
  0x10   : > { %s2600_s26 = scalar_select %p2244_p2, 1, 0 }
  0x11   : > { %p2250_p4 = por %p2240_p1, %p55_p0  ;;  %p2255_p6 = por %p150_p3, %p55_p0 }
  0x12   : > { %p157_p7 = scmp.lt.s32.totalorder %s2152_s22, 5  ;;  %s2154_s30 = smov [#allocation5]  }
  0x13   : > { %s2601_s27 = scalar_select %p2250_p4, 1, 0 }
  0x14   : > { %s2602_s28 = scalar_select %p2255_p6, 1, 0 }
  0x15   : > { %p2260_p8 = pnand %p1687_p5, %p157_p7  ;;  %s175_s5 = sshll.u32 %s2154_s30, 4  ;;  %s176_s5 = int_to_ptr.vmem [resolvable:$true] %s175_s5 }
  0x16   : > { %2603 = sst [smem:[#allocation12_spill]] %s2602_s28  ;;  %s2606_s3 = sld [smem:[#allocation14_spill]] }
  0x17   : > { %s2604_s29 = scalar_select %p2260_p8, 1, 0 }
  0x18   : > { %p1895_p9 = pneg %p2260_p8 }
  0x1a   : > { %p2268_p10 = pnand %p1895_p9, %p2240_p1 }
  0x1c   : > { %s1992_s9 = scalar_lea.hbm %s2606_s3, 256  ;;  %p1994_p12 = pneg %p2268_p10 }
  0x1d   : > { %p1993_p11 = scmp.ne.s32.totalorder %s2606_s3, %s1992_s9  ;;  %p1999_p3 = scmp.lt.u32.totalorder %s1992_s9, %s2606_s3 }
  0x1f   : > { %p1995_p13 = pnand %p1994_p12, %p1993_p11 }
  0x21   : > { %p1996_p0 = pneg %p1995_p13 }
  0x23   : > { %p2001_p5 = pnand %p1999_p3, %p1996_p0 }
  0x25   : > { %2004 = shalt.err (!%p2001_p5)
}
  0x26   : > { %s2005_s14 = scalar_lea.vmem %s176_s5, 256  ;;  %p2013_p1 = scmp.lt.s32.totalorder %s176_s5, %s176_s5 }
  0x27   : > { %p2006_p7 = scmp.ne.s32.totalorder %s176_s5, %s2005_s14  ;;  %p2014_p4 = scmp.lt.s32.totalorder %s2005_s14, %s2005_s14 }
  0x29   : > { %p2008_p9 = pnand %p2006_p7, %p1994_p12  ;;  %p2015_p8 = por %p2014_p4, %p2013_p1 }
  0x2b   : > { %p2009_p6 = pneg %p2008_p9 }
  0x2d   : > { %p2016_p2 = pnand %p2015_p8, %p2009_p6 }
  0x2f   : > { %2019 = shalt.err (!%p2016_p2)
}
  0x30   : > { %s2155_s23 = smov 128   ;;  %s2156_s24 = smov 8  }
  0x31   : > { %1898 = dma.hbm_to_vmem [thread:$0]  (!%p2268_p10), %s2606_s3, 256, %s176_s5, [#allocation6], %s2155_s23, %s2155_s23, %s2156_s24  }
  0x32   : > { %s30_s8 = sadd.s32 1, %s2144_s20  ;;  %s33_s9 = sadd.s32 1, %s2148_s21 }
  0x33   : > { %p31_p1 = scmp.ge.s32.totalorder %s30_s8, 2  ;;  %s42_s10 = sadd.s32 1, %s2132_s17 }
  0x34   : > { %p49_p2 = scmp.ne.s32.totalorder %s2132_s17, %s2128_s16  ;;  %p50_p4 = scmp.eq.s32.totalorder %s2152_s22, 0 }
  0x35   : > { %s2628_s8 = smov (%p31_p1, %s30_s8), 0  ;;  %s2630_s9 = smov (!%p31_p1, %s33_s9), %s2148_s21 }
  0x36   : > { %2607 = sst [smem:[#allocation13_spill]] %s2628_s8  ;;  %s38_s11 = ssub.s32 %s2144_s20, %s2628_s8 }
  0x37   : > { %p35_p6 = scmp.ge.s32.totalorder %s2630_s9, 2  ;;  %p2608_p8 = scmp.ne.s32.totalorder %s2600_s26, 0 }
  0x38   : > { %p2305_p10 = por %p50_p4, %p49_p2  ;;  %p1908_p12 = scmp.lt.s32.totalorder %s2152_s22, 4 }
  0x39   : > { %p2301_p11 = por %p2608_p8, %p49_p2  ;;  %s2632_s9 = smov (%p35_p6, %s2630_s9), 0 }
  0x3a   : > { %s189_s12 = sand.u32 1, %s2132_s17   ;;  %s1691_s13 = sshll.u32 %s2148_s21, 1 }
  0x3b   : > { %s37_s14 = ssub.s32 %s2148_s21, %s2632_s9  ;;  %s1690_s24 = sshll.u32 %s189_s12, 2 }
  0x3c   : > { %s39_s23 = sor.u32 %s38_s11, %s37_s14  ;;  %s198_s26 = sadd.s32 %s2144_s20, %s1691_s13 }
  0x3d   : > { %p40_p13 = scmp.eq.s32.totalorder %s39_s23, 0  ;;  %s193_s30 = scalar_lea.vmem [#allocation2], %s1690_s24 }
  0x3e   : > { %s202_s7 = sshll.u32 %s193_s30, 4  ;;  %s1692_s8 = sshll.u32 %s198_s26, 6  ;;  %s2320_s7 = int_to_ptr.vmem [resolvable:$true] %s202_s7 }
  0x3f   : > { %s2318_s3 = scalar_select %p40_p13, %s2132_s17, %s42_s10  }
  0x40   : > { %s2325_s4 = scalar_lea.hbm %s2583_s0, %s1692_s8  ;;  %p2331_p0 = pnand %p1908_p12, %p2305_p10 }
  0x41   : > { %s190_s10 = scalar_lea.sflag [#allocation3], %s189_s12  ;;  %s2020_s13 = scalar_lea.hbm %s2325_s4, 64 }
  0x42   : > { %p2021_p3 = scmp.ne.s32.totalorder %s2325_s4, %s2020_s13  ;;  %p2022_p5 = pneg %p2331_p0 }
  0x43   : > { %s2025_s8 = scalar_lea.hbm %s2583_s0, 256  ;;  %p2026_p1 = scmp.lt.u32.totalorder %s2325_s4, %s2583_s0 }
  0x44   : > { %p2023_p7 = pnand %p2022_p5, %p2021_p3  ;;  %p2027_p2 = scmp.lt.u32.totalorder %s2025_s8, %s2020_s13 }
  0x45   : > { %p2029_p6 = scmp.lt.u32.totalorder %s2020_s13, %s2325_s4 }
  0x46   : > { %p2024_p9 = pneg %p2023_p7  ;;  %p2028_p4 = por %p2027_p2, %p2026_p1 }
  0x48   : > { %p2030_p8 = por %p2029_p6, %p2028_p4 }
  0x4a   : > { %p2031_p10 = pnand %p2030_p8, %p2024_p9 }
  0x4c   : > { %2034 = shalt.err (!%p2031_p10)
}
  0x4d   : > { %s2035_s12 = scalar_lea.vmem %s2320_s7, 64  ;;  %s2157_s23 = smov [#allocation2]  }
  0x4e   : > { %p2036_p12 = scmp.ne.s32.totalorder %s2320_s7, %s2035_s12  ;;  %s2040_s24 = sshll.u32 %s2157_s23, 4  ;;  %s2041_s24 = int_to_ptr.vmem [resolvable:$false] %s2040_s24 }
  0x4f   : > { %s2042_s26 = scalar_lea.vmem %s2041_s24, 128  ;;  %p2043_p7 = scmp.lt.s32.totalorder %s2320_s7, %s2041_s24 }
  0x50   : > { %p2038_p13 = pnand %p2036_p12, %p2022_p5  ;;  %p2044_p1 = scmp.lt.s32.totalorder %s2042_s26, %s2035_s12 }
  0x52   : > { %p2039_p3 = pneg %p2038_p13  ;;  %p2045_p2 = por %p2044_p1, %p2043_p7 }
  0x54   : > { %p2046_p4 = pnand %p2045_p2, %p2039_p3 }
  0x56   : > { %2049 = shalt.err (!%p2046_p4)
}
  0x57   : > { %1902 = dma.hbm_to_vmem [thread:$0]  (!%p2331_p0), %s2325_s4, 64, %s2320_s7, %s190_s10  }
  0x58   : > { %p2612_p9 = scmp.ne.s32.totalorder %s2604_s29, 0 }
  0x59   : > { %s2363_s30 = sand.u32 (!%p2612_p9), 1, %s2128_s16   ;;  %p2613_p5 = scmp.ne.s32.totalorder (!%p2612_p9), %s2601_s27, 0 }
  0x5a   : > { %211 = sbr.rel (%p2612_p9) target bundleno = 805 (0x325), region = 36  ;;  %s1694_s13 = sshll.u32 (!%p2612_p9), %s2363_s30, 2 }
  0x5b   : > { %s214_s15 = scalar_lea.sflag (!%p2612_p9), [#allocation3], %s2363_s30  ;;  %s2367_s28 = scalar_lea.vmem (!%p2612_p9), [#allocation2], %s1694_s13 }
  0x61   : > { %2111 = dma.done.wait (%p2613_p5), %s214_s15, 64  }
  0x62   : > { %2113 = vsyncadd (%p2613_p5), %s214_s15, 4294967232  ;;  %p2614_p0 = scmp.ne.s32.totalorder %s2599_s25, 0 }
  0x64   : > { %2115 = dma.done.wait (%p2614_p0), [#allocation6], 256  }
  0x65   : > { %2117 = vsyncadd (%p2614_p0), [#allocation6], 4294967040  ;;  %v2158_v0 = vmov 0.0   ;;  %vm2159_vm0 = vmmov 0   ;;  %v424_v1 = vld [vmem:[%s2367_s28] sm:$0xf]  ;;  %v415_v50 = vlaneseq }
  0x66   : > { %1767 = vmatprep.subr.mxu0 %v2158_v0  ;;  %1769 = vmatprep.mubr.msk.f32.mxu0 %vm2159_vm0, %v2158_v0  ;;  %v753_v2 = vld [vmem:[%s2367_s28] sm:$0xf]  ;;  %vm261_vm1 = vcmask 1043456   ;;  %s2160_s4 = smov 112   ;;  %s2161_s25 = smov 80   ;;  %vm257_vm2 = vcmask 31744  }
  0x67   : > { %1776 = vmatprep.mubr.msk.f32.mxu1 %vm2159_vm0, %v2158_v0  ;;  %426 = vrot.lane.b32.xlu0 %v424_v1, %s2160_s4  ;;  %v591_v3 = vld [vmem:[%s2367_s28] sm:$0xf]  ;;  %s2162_s7 = smov 96   ;;  %s2163_s11 = smov 64   ;;  %v249_v11 = vld [vmem:[#allocation5] sm:$0xff]  ;;  %v250_v12 = vld [vmem:[#allocation5 + $0x8] sm:$0xff] }
  0x68   : > { %755 = vrot.lane.b32.xlu1 %v753_v2, %s2161_s25  ;;  %v918_v4 = vld [vmem:[%s2367_s28] sm:$0xf]  ;;  %s2164_s10 = smov 48   ;;  %s2165_s8 = smov 32   ;;  %v2167_v13 = vmov 0   ;;  %v2168_v14 = vmov 0.0|0.0   ;;  %v2405_v15 = vpack.c.bf16 %v250_v12, %v249_v11 }
  0x69   : > { %v251_v5 = vld [vmem:[%s2367_s28] sm:$0xf]  ;;  %s2166_s5 = smov 16   ;;  %1990 = vset.pattern.permute.xlu1 %v2167_v13  ;;  %1863 = vmatprep.subr.bf16.mxu1 %v2168_v14  ;;  %vm335_vm3 = vcmask 130048   ;;  %v2169_v48 = vmov 1983009808  }
  0x6a   : > { %1768 = vmatpush3.msk.msra.mxu0 %vm261_vm1, %v251_v5  ;;  %v247_v6 = vld [vmem:[%s2584_s1] sm:$0x3]  ;;  %1991 = vset.pattern.permute.xlu0 %v2167_v13  ;;  %v413_v49 = vunpack.c.l.s4 %v2169_v48  ;;  %v416_v52 = vshrl.u32 %v415_v50, 7  ;;  %s1696_s23 = sshll.u32 %s2363_s30, 3  ;;  %vm409_vm4 = vcmask 254976   ;;  %vm422_vm5 = vcmask 517376  }
  0x6b   : > { %1770 = vmatmul.mubr.msk.f32.vlgmr.msra.gmra.mrb[0].mxu0 %vm257_vm2, %v247_v6  ;;  %1779 = vmatprep.subr.mxu0 %v2158_v0  ;;  %v1080_v7 = vld [vmem:[%s2367_s28] sm:$0xf]  ;;  %s2477_s24 = scalar_lea.vmem [#allocation7], %s1696_s23  ;;  %vm584_vm6 = vcmask 779776   ;;  %vm589_vm7 = vcmask 1042176   ;;  %s1722_s26 = sshll.u32 %s2136_s18, 2 }
  0x6c   : > { %593 = vrot.lane.b32.xlu0 %v591_v3, %s2162_s7  ;;  %920 = vrot.lane.b32.xlu1 %v918_v4, %s2163_s11  ;;  %v1245_v8 = vld [vmem:[%s2367_s28] sm:$0xf]  ;;  %v414_v51 = vunpack.c.0.s8 %v413_v49  ;;  %s1723_s13 = sshll.u32 %s2140_s19, 3  ;;  %s1589_s4 = sshll.u32 %s2477_s24, 4  ;;  %s2529_s4 = int_to_ptr.vmem [resolvable:$true] %s1589_s4 }
  0x6d   : > { %1781 = vmatprep.mubr.msk.f32.mxu0 %vm2159_vm0, %v2158_v0  ;;  %v1407_v9 = vld [vmem:[%s2367_s28] sm:$0xf]  ;;  %1865 = vmatpush3.bf16.msra.mxu1 %v2405_v15  ;;  %s1585_s15 = sadd.s32 %s1723_s13, %s1722_s26  ;;  %s2615_s29 = sld [smem:[#allocation15_spill]] }
  0x6e   : > { %v248_v10 = vld [vmem:[%s2585_s2] sm:$0x3]  ;;  %1866 = vmatprep.subr.bf16.mxu1 %v2168_v14  ;;  %v417_v53 = vsub.s32 %v414_v51, %v416_v52  ;;  %s1724_s28 = sshll.u32 %s1585_s15, 5  ;;  %s1573_s18 = scalar_lea.sflag [#allocation4], %s2363_s30 }
  0x6f   : > { %s2050_s19 = scalar_lea.vmem %s2529_s4, 128 }
  0x70   : > { %1082 = vrot.lane.b32.xlu0 %v1080_v7, %s2164_s10  ;;  %1247 = vrot.lane.b32.xlu1 %v1245_v8, %s2165_s8  ;;  %p2051_p6 = scmp.ne.s32.totalorder %s2529_s4, %s2050_s19 }
  0x72   : > { %p2052_p8 = pnand %p2051_p6, %p2301_p11 }
  0x74   : > { %1409 = vrot.lane.b32.xlu0 %v1407_v9, %s2166_s5  ;;  %254 = vperm.xlu1 %1990, %v248_v10   ;;  %p2053_p10 = pneg %p2052_p8 }
  0xd9   : > { %v427_v16 = vpop.permute.xlu0 %426 }
  0xda   : > { %1780 = vmatpush3.msk.msra.mxu0 %vm261_vm1, %v427_v16  ;;  %v756_v17 = vpop.permute.xlu1 %755 }
  0xdb   : > { %1782 = vmatmul.mubr.msk.f32.vlgmr.msra.gmra.mrb[2].mxu0 %vm257_vm2, %v247_v6  ;;  %1791 = vmatprep.subr.mxu0 %v2158_v0 }
  0xdc   : > { %1793 = vmatprep.mubr.msk.f32.mxu0 %vm2159_vm0, %v2158_v0 }
  0xde   : > { %v594_v18 = vpop.permute.xlu0 %593  ;;  %v921_v19 = vpop.permute.xlu1 %920 }
  0xdf   : > { %1792 = vmatpush3.msk.msra.mxu0 %vm261_vm1, %v594_v18 }
  0xe0   : > { %1794 = vmatmul.mubr.msk.f32.vlgmr.msra.gmra.mrb[4].mxu0 %vm257_vm2, %v247_v6  ;;  %1803 = vmatprep.subr.mxu0 %v2158_v0 }
  0xe1   : > { %1804 = vmatpush3.msk.msra.mxu0 %vm261_vm1, %v756_v17  ;;  %1805 = vmatprep.mubr.msk.f32.mxu0 %vm2159_vm0, %v2158_v0 }
  0xe2   : > { %1815 = vmatprep.subr.mxu0 %v2158_v0  ;;  %v1083_v20 = vpop.permute.xlu0 %1082  ;;  %v1248_v21 = vpop.permute.xlu1 %1247 }
  0xe4   : > { %1806 = vmatmul.mubr.msk.f32.vlgmr.msra.gmra.mrb[6].mxu0 %vm257_vm2, %v247_v6 }
  0xe5   : > { %1816 = vmatpush3.msk.msra.mxu0 %vm261_vm1, %v921_v19  ;;  %1817 = vmatprep.mubr.msk.f32.mxu0 %vm2159_vm0, %v2158_v0 }
  0xe6   : > { %1827 = vmatprep.subr.mxu0 %v2158_v0  ;;  %v1410_v22 = vpop.permute.xlu0 %1409 }
  0xe8   : > { %1818 = vmatmul.mubr.msk.f32.vlgmr.msra.gmra.mrb[8].mxu0 %vm257_vm2, %v247_v6 }
  0xe9   : > { %1828 = vmatpush3.msk.msra.mxu0 %vm261_vm1, %v1083_v20  ;;  %1829 = vmatprep.mubr.msk.f32.mxu0 %vm2159_vm0, %v2158_v0 }
  0xea   : > { %1839 = vmatprep.subr.mxu0 %v2158_v0 }
  0xec   : > { %1830 = vmatmul.mubr.msk.f32.vlgmr.msra.gmra.mrb[10].mxu0 %vm257_vm2, %v247_v6 }
  0xed   : > { %1840 = vmatpush3.msk.msra.mxu0 %vm261_vm1, %v1248_v21  ;;  %1841 = vmatprep.mubr.msk.f32.mxu0 %vm2159_vm0, %v2158_v0 }
  0xee   : > { %1851 = vmatprep.subr.mxu0 %v2158_v0 }
  0xf0   : > { %1842 = vmatmul.mubr.msk.f32.vlgmr.msra.gmra.mrb[12].mxu0 %vm257_vm2, %v247_v6 }
  0xf1   : > { %1852 = vmatpush3.msk.msra.mxu0 %vm261_vm1, %v1410_v22  ;;  %1853 = vmatprep.mubr.msk.f32.mxu0 %vm2159_vm0, %v2158_v0 }
  0xf3   : > { %v255_v23 = vpop.permute.xlu1 %254 }
  0xf4   : > { %1854 = vmatmul.mubr.msk.f32.vlgmr.msra.gmra.mrb[14].mxu0 %vm257_vm2, %v247_v6 }
 0x13e   : > { %v331_v24 = vpop.f32.mrb[0].mxu0 }
 0x13f   : > { %v332_v25 = vadd.f32 %v331_v24, %v255_v23  ;;  %v1771_v26 = vpop.f32.mrb[1].mxu0 }
 0x141   : > { %1777 = vmatmul.mubr.msk.f32.vlgmr.msra.gmra.mrb[0].mxu1 %vm335_vm3, %v332_v25 }
 0x142   : > { %1868 = vmatpush3.bf16.msra.mxu1 %v2405_v15  ;;  %1788 = vmatprep.mubr.msk.f32.mxu1 %vm2159_vm0, %v2158_v0 }
 0x143   : > { %1869 = vmatprep.subr.bf16.mxu1 %v2168_v14 }
 0x1ae   : > { %v496_v27 = vpop.f32.mrb[2].mxu0 }
 0x1af   : > { %v497_v28 = vadd.f32 %v496_v27, %v255_v23  ;;  %v1783_v29 = vpop.f32.mrb[3].mxu0 }
 0x1b1   : > { %1789 = vmatmul.mubr.msk.f32.vlgmr.msra.gmra.mrb[2].mxu1 %vm335_vm3, %v497_v28 }
 0x1b2   : > { %1871 = vmatpush3.bf16.msra.mxu1 %v2405_v15  ;;  %1800 = vmatprep.mubr.msk.f32.mxu1 %vm2159_vm0, %v2158_v0 }
 0x1b3   : > { %v663_v30 = vpop.f32.mrb[4].mxu0  ;;  %1872 = vmatprep.subr.bf16.mxu1 %v2168_v14 }
 0x1b4   : > { %v664_v31 = vadd.f32 %v663_v30, %v255_v23  ;;  %v1795_v32 = vpop.f32.mrb[5].mxu0 }
 0x1b6   : > { %1801 = vmatmul.mubr.msk.f32.vlgmr.msra.gmra.mrb[4].mxu1 %vm335_vm3, %v664_v31 }
 0x1b7   : > { %v825_v33 = vpop.f32.mrb[6].mxu0  ;;  %1874 = vmatpush3.bf16.msra.mxu1 %v2405_v15  ;;  %1812 = vmatprep.mubr.msk.f32.mxu1 %vm2159_vm0, %v2158_v0 }
 0x1b8   : > { %v826_v34 = vadd.f32 %v825_v33, %v255_v23  ;;  %v1807_v35 = vpop.f32.mrb[7].mxu0  ;;  %1875 = vmatprep.subr.bf16.mxu1 %v2168_v14 }
 0x1ba   : > { %1813 = vmatmul.mubr.msk.f32.vlgmr.msra.gmra.mrb[6].mxu1 %vm335_vm3, %v826_v34 }
 0x1bb   : > { %v990_v36 = vpop.f32.mrb[8].mxu0  ;;  %1877 = vmatpush3.bf16.msra.mxu1 %v2405_v15  ;;  %1824 = vmatprep.mubr.msk.f32.mxu1 %vm2159_vm0, %v2158_v0 }
 0x1bc   : > { %v991_v37 = vadd.f32 %v990_v36, %v255_v23  ;;  %v1819_v38 = vpop.f32.mrb[9].mxu0  ;;  %1878 = vmatprep.subr.bf16.mxu1 %v2168_v14 }
 0x1be   : > { %1825 = vmatmul.mubr.msk.f32.vlgmr.msra.gmra.mrb[8].mxu1 %vm335_vm3, %v991_v37 }
 0x1bf   : > { %v1152_v39 = vpop.f32.mrb[10].mxu0  ;;  %1880 = vmatpush3.bf16.msra.mxu1 %v2405_v15  ;;  %1836 = vmatprep.mubr.msk.f32.mxu1 %vm2159_vm0, %v2158_v0 }
 0x1c0   : > { %v1153_v40 = vadd.f32 %v1152_v39, %v255_v23  ;;  %v1831_v41 = vpop.f32.mrb[11].mxu0  ;;  %1881 = vmatprep.subr.bf16.mxu1 %v2168_v14 }
 0x1c2   : > { %1837 = vmatmul.mubr.msk.f32.vlgmr.msra.gmra.mrb[10].mxu1 %vm335_vm3, %v1153_v40 }
 0x1c3   : > { %v1317_v42 = vpop.f32.mrb[12].mxu0  ;;  %1883 = vmatpush3.bf16.msra.mxu1 %v2405_v15  ;;  %1848 = vmatprep.mubr.msk.f32.mxu1 %vm2159_vm0, %v2158_v0 }
 0x1c4   : > { %v1318_v43 = vadd.f32 %v1317_v42, %v255_v23  ;;  %v1843_v44 = vpop.f32.mrb[13].mxu0  ;;  %1884 = vmatprep.subr.bf16.mxu1 %v2168_v14 }
 0x1c6   : > { %1849 = vmatmul.mubr.msk.f32.vlgmr.msra.gmra.mrb[12].mxu1 %vm335_vm3, %v1318_v43 }
 0x1c7   : > { %v1479_v45 = vpop.f32.mrb[14].mxu0  ;;  %1886 = vmatpush3.bf16.msra.mxu1 %v2405_v15  ;;  %1860 = vmatprep.mubr.msk.f32.mxu1 %vm2159_vm0, %v2158_v0 }
 0x1c8   : > { %v1480_v46 = vadd.f32 %v1479_v45, %v255_v23  ;;  %v1855_v47 = vpop.f32.mrb[15].mxu0 }
 0x1ca   : > { %1861 = vmatmul.mubr.msk.f32.vlgmr.msra.gmra.mrb[14].mxu1 %vm335_vm3, %v1480_v46 }
 0x214   : > { %v405_v54 = vpop.f32.mrb[0].mxu1 }
 0x215   : > { %410 = vst.msk [vmem:[%s2477_s24] sm:$0x3] %vm409_vm4, %v405_v54  ;;  %v418_v55 = vrot.slane %v405_v54, %v417_v53  ;;  %v1778_v56 = vpop.f32.mrb[1].mxu1 }
 0x217   : > { %419 = vrot.lane.b32.xlu0 %v418_v55, %s2165_s8 }
 0x284   : > { %v569_v57 = vpop.f32.mrb[2].mxu1 }
 0x285   : > { %v580_v58 = vrot.slane %v569_v57, %v417_v53  ;;  %v1790_v59 = vpop.f32.mrb[3].mxu1 }
 0x287   : > { %581 = vrot.lane.b32.xlu0 %v580_v58, %s2163_s11 }
 0x289   : > { %v736_v60 = vpop.f32.mrb[4].mxu1  ;;  %v420_v61 = vpop.permute.xlu0 %419 }
 0x28a   : > { %740 = vst.msk [vmem:[%s2477_s24 + $0x2] sm:$0x3] %vm409_vm4, %v736_v60  ;;  %v748_v62 = vrot.slane %v736_v60, %v417_v53  ;;  %v1802_v63 = vpop.f32.mrb[5].mxu1 }
 0x28b   : > { %423 = vst.msk [vmem:[%s2477_s24] sm:$0x3] %vm422_vm5, %v420_v61  ;;  %586 = vrot.lane.b32.xlu0 %v580_v58, %s2162_s7 }
 0x28c   : > { %749 = vrot.lane.b32.xlu1 %v748_v62, %s2165_s8 }
 0x28d   : > { %v898_v0 = vpop.f32.mrb[6].mxu1 }
 0x28e   : > { %v909_v1 = vrot.slane %v898_v0, %v417_v53  ;;  %v1814_v2 = vpop.f32.mrb[7].mxu1 }
 0x290   : > { %910 = vrot.lane.b32.xlu1 %v909_v1, %s2163_s11 }
 0x291   : > { %v1063_v3 = vpop.f32.mrb[8].mxu1 }
 0x292   : > { %1067 = vst.msk [vmem:[%s2477_s24 + $0x4] sm:$0x3] %vm409_vm4, %v1063_v3  ;;  %v1075_v4 = vrot.slane %v1063_v3, %v417_v53  ;;  %v1826_v5 = vpop.f32.mrb[9].mxu1 }
 0x294   : > { %914 = vrot.lane.b32.xlu1 %v909_v1, %s2162_s7  ;;  %1076 = vrot.lane.b32.xlu0 %v1075_v4, %s2165_s8 }
 0x295   : > { %v1225_v6 = vpop.f32.mrb[10].mxu1 }
 0x296   : > { %v1236_v7 = vrot.slane %v1225_v6, %v417_v53  ;;  %v1838_v8 = vpop.f32.mrb[11].mxu1 }
 0x298   : > { %1237 = vrot.lane.b32.xlu0 %v1236_v7, %s2163_s11 }
 0x299   : > { %v1390_v9 = vpop.f32.mrb[12].mxu1 }
 0x29a   : > { %1394 = vst.msk [vmem:[%s2477_s24 + $0x6] sm:$0x3] %vm409_vm4, %v1390_v9  ;;  %v1402_v10 = vrot.slane %v1390_v9, %v417_v53  ;;  %v1850_v11 = vpop.f32.mrb[13].mxu1 }
 0x29c   : > { %1241 = vrot.lane.b32.xlu0 %v1236_v7, %s2162_s7  ;;  %1403 = vrot.lane.b32.xlu1 %v1402_v10, %s2165_s8 }
 0x29d   : > { %v1552_v12 = vpop.f32.mrb[14].mxu1 }
 0x29e   : > { %v1563_v13 = vrot.slane %v1552_v12, %v417_v53  ;;  %v1862_v14 = vpop.f32.mrb[15].mxu1 }
 0x2a0   : > { %1564 = vrot.lane.b32.xlu1 %v1563_v13, %s2163_s11  ;;  %s2170_s11 = smov [#allocation7]  }
 0x2a1   : > { %s2054_s10 = sshll.u32 %s2170_s11, 4  ;;  %s2055_s10 = int_to_ptr.vmem [resolvable:$false] %s2054_s10 }
 0x2a2   : > { %s2056_s8 = scalar_lea.vmem %s2055_s10, 256  ;;  %p2057_p12 = scmp.lt.s32.totalorder %s2529_s4, %s2055_s10 }
 0x2a3   : > { %p2058_p13 = scmp.lt.s32.totalorder %s2056_s8, %s2050_s19 }
 0x2a4   : > { %1568 = vrot.lane.b32.xlu1 %v1563_v13, %s2162_s7  ;;  %s2527_s7 = scalar_lea.hbm %s2615_s29, %s1724_s28 }
 0x2a5   : > { %p2059_p3 = por %p2058_p13, %p2057_p12 }
 0x2a7   : > { %p2060_p7 = pnand %p2059_p3, %p2053_p10 }
 0x2f9   : > { %v582_v15 = vpop.permute.xlu0 %581 }
 0x2fa   : > { %585 = vst.msk [vmem:[%s2477_s24] sm:$0x3] %vm584_vm6, %v582_v15 }
 0x2fd   : > { %v587_v16 = vpop.permute.xlu0 %586 }
 0x2fe   : > { %v750_v17 = vpop.permute.xlu1 %749  ;;  %590 = vst.msk [vmem:[%s2477_s24] sm:$0x3] %vm589_vm7, %v587_v16 }
 0x2ff   : > { %752 = vst.msk [vmem:[%s2477_s24 + $0x2] sm:$0x3] %vm422_vm5, %v750_v17 }
 0x302   : > { %v911_v18 = vpop.permute.xlu1 %910 }
 0x303   : > { %913 = vst.msk [vmem:[%s2477_s24 + $0x2] sm:$0x3] %vm584_vm6, %v911_v18 }
 0x306   : > { %v915_v19 = vpop.permute.xlu1 %914  ;;  %v1077_v20 = vpop.permute.xlu0 %1076 }
 0x307   : > { %917 = vst.msk [vmem:[%s2477_s24 + $0x2] sm:$0x3] %vm589_vm7, %v915_v19 }
 0x308   : > { %1079 = vst.msk [vmem:[%s2477_s24 + $0x4] sm:$0x3] %vm422_vm5, %v1077_v20 }
 0x30a   : > { %v1238_v21 = vpop.permute.xlu0 %1237 }
 0x30b   : > { %1240 = vst.msk [vmem:[%s2477_s24 + $0x4] sm:$0x3] %vm584_vm6, %v1238_v21 }
 0x30e   : > { %v1242_v22 = vpop.permute.xlu0 %1241  ;;  %v1404_v23 = vpop.permute.xlu1 %1403 }
 0x30f   : > { %1244 = vst.msk [vmem:[%s2477_s24 + $0x4] sm:$0x3] %vm589_vm7, %v1242_v22 }
 0x310   : > { %1406 = vst.msk [vmem:[%s2477_s24 + $0x6] sm:$0x3] %vm422_vm5, %v1404_v23 }
 0x312   : > { %v1565_v24 = vpop.permute.xlu1 %1564 }
 0x313   : > { %1567 = vst.msk [vmem:[%s2477_s24 + $0x6] sm:$0x3] %vm584_vm6, %v1565_v24 }
 0x316   : > { %v1569_v25 = vpop.permute.xlu1 %1568 }
 0x317   : > { %1571 = vst.msk [vmem:[%s2477_s24 + $0x6] sm:$0x3] %vm589_vm7, %v1569_v25 }
 0x318   : > { %2063 = shalt.err (!%p2060_p7)
}
 0x319   : > { %s2064_s30 = scalar_lea.hbm %s2527_s7, 128  ;;  %s2068_s12 = scalar_lea.hbm %s2615_s29, 512 }
 0x31a   : > { %p2065_p1 = scmp.ne.s32.totalorder %s2527_s7, %s2064_s30  ;;  %p2069_p9 = scmp.lt.u32.totalorder %s2527_s7, %s2615_s29 }
 0x31b   : > { %p2070_p5 = scmp.lt.u32.totalorder %s2068_s12, %s2064_s30  ;;  %p2072_p6 = scmp.lt.u32.totalorder %s2064_s30, %s2527_s7 }
 0x31c   : > { %p2066_p2 = pnand %p2065_p1, %p2301_p11 }
 0x31d   : > { %p2071_p0 = por %p2070_p5, %p2069_p9 }
 0x31e   : > { %p2067_p4 = pneg %p2066_p2 }
 0x31f   : > { %p2073_p8 = por %p2072_p6, %p2071_p0 }
 0x321   : > { %p2074_p10 = pnand %p2073_p8, %p2067_p4 }
 0x323   : > { %2077 = shalt.err (!%p2074_p10)
}
 0x324   : > { %1893 = dma.vmem_to_hbm [thread:$0]  (%p2301_p11), %s2529_s4, 128, %s2527_s7, %s1573_s18  }
 0x325 PF: > { %s2616_s26 = sld [smem:[#allocation11_spill]]  ;;  %s2617_s13 = sld [smem:[#allocation12_spill]] }
 0x326   : > { %p1910_p12 = scmp.ge.s32.totalorder %s2152_s22, 2 }
 0x32b   : > { %s1601_s15 = sand.u32 1, %s2616_s26   ;;  %p2618_p13 = scmp.ne.s32.totalorder %s2617_s13, 0 }
 0x32c   : > { %s1602_s28 = scalar_lea.sflag [#allocation4], %s1601_s15 }
 0x32d   : > { %p1904_p3 = pnand %p1910_p12, %p2618_p13 }
 0x32f   : > { %2119 = dma.done.wait (!%p1904_p3), %s1602_s28, 128  }
 0x330   : > { %2121 = vsyncadd (!%p1904_p3), %s1602_s28, 4294967168  ;;  %s21_s22 = sadd.s32 1, %s2152_s22   ;;  %s2619_s6 = sld [smem:[#allocation13_spill]] }
 0x331   : > { %p18_p7 = scmp.ge.s32.totalorder %s21_s22, 6   ;;  %s2620_s15 = smov %s2128_s16 }
 0x332   : > { %s2621_s16 = smov %s2132_s17  ;;  %s2622_s17 = smov %s2318_s3 }
 0x333   : > { %s2623_s18 = smov %s2144_s20  ;;  %s2624_s19 = smov %s2148_s21 }
 0x334   : > { %s2626_s21 = smov %s2632_s9  ;;  %20 = sbr.rel (!%p18_p7) target bundleno = 11 (0xb), region = 85 }
 0x336   : > { %s2625_s20 = smov %s2619_s6 }
 0x33b   :  { %1607 = vsyncpa [#allocation3], 1 }
 0x33c   :  { %1609 = vsyncpa [#allocation3 + $0x1], 1 }
 0x33d   :  { %1610 = vsyncpa [#allocation6], 1 }
 0x33e   :  { %1611 = vsyncpa [#allocation4], 1 }
 0x33f   :  { %1613 = vsyncpa [#allocation4 + $0x1], 1 }

</bundles_post_ra>
